<compile_context>
chip_gen: v5e
topology: v5e:2x2
jax: 0.10.0
libtpu: 0.0.40
codegen_flags: <defaults>
</compile_context>

<pallas_src>
import functools

import jax
import jax.numpy as jnp
from jax.experimental import pallas as pl
from jax.experimental.pallas import tpu as pltpu


def _lm_head_kernel(x_ref, w1_ref, b1_ref, g_ref, bt_ref, w2_ref, b2_ref,
                    o_ref, h_ref, *, eps: float):
    # Prologue (dense -> gelu -> layernorm) runs once per row tile, at the
    # first vocab step, and is cached in VMEM scratch for all vocab tiles.
    @pl.when(pl.program_id(1) == 0)
    def _dense_gelu_ln():
        # MXU matmul in native dtype (bf16 fast path), f32 accumulate.
        h = jnp.dot(x_ref[...], w1_ref[...], preferred_element_type=jnp.float32)
        h = h + b1_ref[...].astype(jnp.float32)
        # GELU (tanh approximation) — EUP tanh, free next to the MXU.
        h = jax.nn.gelu(h, approximate=True)
        # LayerNorm over the hidden (lane) axis, f32 math.
        mean = jnp.mean(h, axis=-1, keepdims=True)
        c = h - mean
        var = jnp.mean(c * c, axis=-1, keepdims=True)
        inv = jax.lax.rsqrt(var + eps)
        normed = c * inv * g_ref[...].astype(jnp.float32) \
            + bt_ref[...].astype(jnp.float32)
        # Store back in the input dtype so the decoder matmul also takes the
        # native-dtype MXU path.
        h_ref[...] = normed.astype(h_ref.dtype)

    # Decoder tile: (tm, H) @ (H, tnv) + b2 tile.
    logits = jnp.dot(h_ref[...], w2_ref[...], preferred_element_type=jnp.float32)
    logits = logits + b2_ref[...].astype(jnp.float32)
    o_ref[...] = logits.astype(o_ref.dtype)


def _vmem_limit_bytes():
    """~75% of physical VMEM (falls back to a v7x-safe 48 MiB)."""
    try:
        info = pltpu.get_tpu_info()
        cap = getattr(info, "vmem_capacity_bytes", None)
        if cap:
            return int(cap) * 3 // 4
    except Exception:
        pass
    return 48 * 1024 * 1024


def summaryformer_lm_head(features, dense_w_t, dense_b, ln_gamma, ln_beta,
                          decoder_w_t, decoder_b, *, eps=1e-12,
                          tile_rows=None, tile_vocab=None):
    """features: (B, S, H).
    dense_w_t:   (H, H)  = PyTorch dense.weight.T  (pre-transposed at load time)
    decoder_w_t: (H, V)  = PyTorch decoder.weight.T (pre-transposed at load time)
    dense_b: (H,), ln_gamma/ln_beta: (H,), decoder_b: (V,).
    Returns (B, S, V) logits."""
    B, S, H = features.shape
    H2, V = decoder_w_t.shape
    assert dense_w_t.shape == (H, H) and H2 == H
    M = B * S
    dtype = features.dtype

    # Tile sizes: rows ~256 (sweepable), vocab ~512 lanes; fall back to the
    # full extent for small problems (block == full dim is always layout-legal).
    tm = tile_rows if tile_rows is not None else min(256, M)
    tnv = tile_vocab if tile_vocab is not None else min(512, V)
    m_pad = pl.cdiv(M, tm) * tm
    v_pad = pl.cdiv(V, tnv) * tnv

    x2d = features.reshape(M, H)
    if m_pad != M:
        x2d = jnp.pad(x2d, ((0, m_pad - M), (0, 0)))
    w2 = decoder_w_t
    b2 = decoder_b.reshape(1, V)
    if v_pad != V:
        w2 = jnp.pad(w2, ((0, 0), (0, v_pad - V)))
        b2 = jnp.pad(b2, ((0, 0), (0, v_pad - V)))
    b1 = dense_b.reshape(1, H)
    g2d = ln_gamma.reshape(1, H)
    bt2d = ln_beta.reshape(1, H)

    itemsize = jnp.dtype(dtype).itemsize
    cost = pl.CostEstimate(
        flops=int(2 * M * H * H + 2 * M * H * V),
        transcendentals=int(M * H),          # tanh in GELU (+ rsqrt, negligible)
        bytes_accessed=int((2 * M * H + H * H + H * V + V + M * V) * itemsize),
    )

    kernel = functools.partial(_lm_head_kernel, eps=float(eps))

    def _build(single_buffer_invariants):
        inv_kwargs = (
            dict(pipeline_mode=pl.Buffered(1)) if single_buffer_invariants else {}
        )

        def inv_spec(shape):
            # Grid-invariant operand: block index never changes.
            return pl.BlockSpec(shape, lambda i, j: (0, 0), **inv_kwargs)

        grid_spec = pltpu.PrefetchScalarGridSpec(
            num_scalar_prefetch=0,
            grid=(m_pad // tm, v_pad // tnv),
            in_specs=[
                pl.BlockSpec((tm, H), lambda i, j: (i, 0)),    # activation rows
                inv_spec((H, H)),                              # dense weight (H_in, H_out)
                inv_spec((1, H)),                              # dense bias
                inv_spec((1, H)),                              # LN gamma
                inv_spec((1, H)),                              # LN beta
                pl.BlockSpec((H, tnv), lambda i, j: (0, j)),   # decoder weight slab
                pl.BlockSpec((1, tnv), lambda i, j: (0, j)),   # decoder bias slab
            ],
            out_specs=pl.BlockSpec((tm, tnv), lambda i, j: (i, j)),
            scratch_shapes=[pltpu.VMEM((tm, H), dtype)],        # cached LN output
        )
        return pl.pallas_call(
            kernel,
            out_shape=jax.ShapeDtypeStruct((m_pad, v_pad), dtype),
            grid_spec=grid_spec,
            compiler_params=pltpu.CompilerParams(
                dimension_semantics=("parallel", "arbitrary"),
                vmem_limit_bytes=_vmem_limit_bytes(),
            ),
            cost_estimate=cost,
        )

    args = (x2d, dense_w_t, b1, g2d, bt2d, w2, b2)
    try:
        out2d = _build(single_buffer_invariants=True)(*args)
    except Exception:
        # pipeline_mode=pl.Buffered(1) not honored by this Pallas version;
        # fall back to default double-buffering of the invariant operands.
        out2d = _build(single_buffer_invariants=False)(*args)

    return out2d[:M, :V].reshape(B, S, V)


def _reference(features, dense_w_pt, dense_b, ln_gamma, ln_beta,
               decoder_w_pt, decoder_b, eps=1e-12):
    """Pure-JAX reference using PyTorch-layout (out, in) weights, f32 math."""
    f32 = jnp.float32
    x = jnp.einsum("bsh,oh->bso", features.astype(f32), dense_w_pt.astype(f32))
    x = x + dense_b.astype(f32)
    x = jax.nn.gelu(x, approximate=True)
    mean = jnp.mean(x, axis=-1, keepdims=True)
    var = jnp.mean((x - mean) ** 2, axis=-1, keepdims=True)
    x = (x - mean) / jnp.sqrt(var + eps) * ln_gamma.astype(f32) + ln_beta.astype(f32)
    return jnp.einsum("bsh,vh->bsv", x, decoder_w_pt.astype(f32)) + decoder_b.astype(f32)


if __name__ == "__main__":
    B, S, H, V = 2, 8, 32, 64
    eps = 1e-12

    key = jax.random.PRNGKey(0)
    k1, k2, k3, k4, k5 = jax.random.split(key, 5)

    features = jax.random.normal(k1, (B, S, H), dtype=jnp.float32)

    # PyTorch-layout parameters (out_features, in_features).
    dense_w_pt = jax.random.normal(k2, (H, H), dtype=jnp.float32) * 0.02
    dense_b = jax.random.normal(k3, (H,), dtype=jnp.float32) * 0.02
    ln_gamma = jnp.ones((H,), dtype=jnp.float32)
    ln_beta = jnp.zeros((H,), dtype=jnp.float32)
    decoder_w_pt = jax.random.normal(k4, (V, H), dtype=jnp.float32) * 0.02
    decoder_b = jax.random.normal(k5, (V,), dtype=jnp.float32) * 0.02

    # Pre-transpose once at parameter-load time (not inside the forward call).
    dense_w_t = jnp.asarray(dense_w_pt.T)        # (H_in, H_out)
    decoder_w_t = jnp.asarray(decoder_w_pt.T)    # (H, V)

    out = summaryformer_lm_head(features, dense_w_t, dense_b, ln_gamma, ln_beta,
                                decoder_w_t, decoder_b, eps=eps)
    out = jax.block_until_ready(out)

    ref = _reference(features, dense_w_pt, dense_b, ln_gamma, ln_beta,
                     decoder_w_pt, decoder_b, eps)
    assert out.shape == (B, S, V)
    assert jnp.allclose(out, ref, atol=1e-4, rtol=1e-4), "mismatch vs reference"

    # bf16 smoke run to exercise the native-dtype MXU path end to end.
    out_bf16 = summaryformer_lm_head(
        features.astype(jnp.bfloat16), dense_w_t.astype(jnp.bfloat16),
        dense_b.astype(jnp.bfloat16), ln_gamma.astype(jnp.bfloat16),
        ln_beta.astype(jnp.bfloat16), decoder_w_t.astype(jnp.bfloat16),
        decoder_b.astype(jnp.bfloat16), eps=eps)
    out_bf16 = jax.block_until_ready(out_bf16)
    assert out_bf16.shape == (B, S, V)
    assert bool(jnp.all(jnp.isfinite(out_bf16.astype(jnp.float32))))

    print("KERNEL_OK")
</pallas_src>

<mosaic_0001>
module attributes {stable_mosaic.version = 11 : i64} {
  func.func @_lm_head_kernel(%arg0: i32, %arg1: i32, %arg2: memref<16x32xf32, #tpu.memory_space<vmem>>, %arg3: memref<32x32xf32, #tpu.memory_space<vmem>>, %arg4: memref<1x32xf32, #tpu.memory_space<vmem>>, %arg5: memref<1x32xf32, #tpu.memory_space<vmem>>, %arg6: memref<1x32xf32, #tpu.memory_space<vmem>>, %arg7: memref<32x64xf32, #tpu.memory_space<vmem>>, %arg8: memref<1x64xf32, #tpu.memory_space<vmem>>, %arg9: memref<16x64xf32, #tpu.memory_space<vmem>>, %arg10: memref<16x32xf32, #tpu.memory_space<vmem>>) attributes {dimension_semantics = [#tpu.dimension_semantics<parallel>, #tpu.dimension_semantics<arbitrary>], iteration_bounds = array<i64: 1, 1>, scalar_prefetch = 0 : i64, scratch_operands = 1 : i64, tpu.core_type = #tpu.core_type<tc>, window_params = [{transform_indices = @transform_0, window_bounds = array<i64: 16, 32>}, {pipeline_mode = #tpu.pipeline_mode<synchronous>, transform_indices = @transform_1, window_bounds = array<i64: 32, 32>}, {pipeline_mode = #tpu.pipeline_mode<synchronous>, transform_indices = @transform_2, window_bounds = array<i64: 1, 32>}, {pipeline_mode = #tpu.pipeline_mode<synchronous>, transform_indices = @transform_3, window_bounds = array<i64: 1, 32>}, {pipeline_mode = #tpu.pipeline_mode<synchronous>, transform_indices = @transform_4, window_bounds = array<i64: 1, 32>}, {transform_indices = @transform_5, window_bounds = array<i64: 32, 64>}, {transform_indices = @transform_6, window_bounds = array<i64: 1, 64>}, {transform_indices = @transform_7, window_bounds = array<i64: 16, 64>}]} {
    %c0_i32 = arith.constant 0 : i32
    %0 = arith.cmpi eq, %arg1, %c0_i32 : i32
    %1 = arith.extui %0 : i1 to i32
    %c0_i32_0 = arith.constant 0 : i32
    %2 = arith.cmpi ne, %1, %c0_i32_0 : i32
    scf.if %2 {
      %c0_8 = arith.constant 0 : index
      %c0_9 = arith.constant 0 : index
      %10 = vector.load %arg2[%c0_8, %c0_9] : memref<16x32xf32, #tpu.memory_space<vmem>>, vector<16x32xf32>
      %c0_10 = arith.constant 0 : index
      %c0_11 = arith.constant 0 : index
      %11 = vector.load %arg3[%c0_10, %c0_11] : memref<32x32xf32, #tpu.memory_space<vmem>>, vector<32x32xf32>
      %cst_12 = arith.constant dense<0.000000e+00> : vector<16x32xf32>
      %12 = tpu.matmul %10, %11, %cst_12 {dimension_numbers = #tpu.dot_dimension_numbers<[1], [0], [0], [1], [0, 0, 1, 1], [], []>} : vector<16x32xf32>, vector<32x32xf32>, vector<16x32xf32> -> vector<16x32xf32>
      %c0_13 = arith.constant 0 : index
      %c0_14 = arith.constant 0 : index
      %13 = vector.load %arg4[%c0_13, %c0_14] : memref<1x32xf32, #tpu.memory_space<vmem>>, vector<1x32xf32>
      %14 = vector.broadcast %13 : vector<1x32xf32> to vector<16x32xf32>
      %15 = arith.addf %12, %14 : vector<16x32xf32>
      %16 = arith.mulf %15, %15 : vector<16x32xf32>
      %17 = arith.mulf %15, %16 : vector<16x32xf32>
      %cst_15 = arith.constant 4.471500e-02 : f32
      %18 = vector.broadcast %cst_15 : f32 to vector<16x32xf32>
      %19 = arith.mulf %18, %17 : vector<16x32xf32>
      %20 = arith.addf %15, %19 : vector<16x32xf32>
      %cst_16 = arith.constant 0.797884583 : f32
      %21 = vector.broadcast %cst_16 : f32 to vector<16x32xf32>
      %22 = arith.mulf %21, %20 : vector<16x32xf32>
      %23 = math.tanh %22 : vector<16x32xf32>
      %cst_17 = arith.constant 1.000000e+00 : f32
      %24 = vector.broadcast %cst_17 : f32 to vector<16x32xf32>
      %25 = arith.addf %24, %23 : vector<16x32xf32>
      %cst_18 = arith.constant 5.000000e-01 : f32
      %26 = vector.broadcast %cst_18 : f32 to vector<16x32xf32>
      %27 = arith.mulf %26, %25 : vector<16x32xf32>
      %28 = arith.mulf %15, %27 : vector<16x32xf32>
      %cst_19 = arith.constant dense<0.000000e+00> : vector<16xf32>
      %29 = vector.multi_reduction <add>, %28, %cst_19 [1] : vector<16x32xf32> to vector<16xf32>
      %30 = vector.shape_cast %29 : vector<16xf32> to vector<16x1xf32>
      %cst_20 = arith.constant 3.200000e+01 : f32
      %31 = vector.broadcast %cst_20 : f32 to vector<16x1xf32>
      %32 = arith.divf %30, %31 : vector<16x1xf32>
      %33 = vector.broadcast %32 : vector<16x1xf32> to vector<16x32xf32>
      %34 = arith.subf %28, %33 : vector<16x32xf32>
      %35 = arith.mulf %34, %34 : vector<16x32xf32>
      %cst_21 = arith.constant dense<0.000000e+00> : vector<16xf32>
      %36 = vector.multi_reduction <add>, %35, %cst_21 [1] : vector<16x32xf32> to vector<16xf32>
      %37 = vector.shape_cast %36 : vector<16xf32> to vector<16x1xf32>
      %cst_22 = arith.constant 3.200000e+01 : f32
      %38 = vector.broadcast %cst_22 : f32 to vector<16x1xf32>
      %39 = arith.divf %37, %38 : vector<16x1xf32>
      %cst_23 = arith.constant 9.99999996E-13 : f32
      %40 = vector.broadcast %cst_23 : f32 to vector<16x1xf32>
      %41 = arith.addf %39, %40 : vector<16x1xf32>
      %42 = math.rsqrt %41 : vector<16x1xf32>
      %43 = vector.broadcast %42 : vector<16x1xf32> to vector<16x32xf32>
      %44 = arith.mulf %34, %43 : vector<16x32xf32>
      %c0_24 = arith.constant 0 : index
      %c0_25 = arith.constant 0 : index
      %45 = vector.load %arg5[%c0_24, %c0_25] : memref<1x32xf32, #tpu.memory_space<vmem>>, vector<1x32xf32>
      %46 = vector.broadcast %45 : vector<1x32xf32> to vector<16x32xf32>
      %47 = arith.mulf %44, %46 : vector<16x32xf32>
      %c0_26 = arith.constant 0 : index
      %c0_27 = arith.constant 0 : index
      %48 = vector.load %arg6[%c0_26, %c0_27] : memref<1x32xf32, #tpu.memory_space<vmem>>, vector<1x32xf32>
      %49 = vector.broadcast %48 : vector<1x32xf32> to vector<16x32xf32>
      %50 = arith.addf %47, %49 : vector<16x32xf32>
      %c0_28 = arith.constant 0 : index
      %c0_29 = arith.constant 0 : index
      %51 = vector.load %arg10[%c0_28, %c0_29] : memref<16x32xf32, #tpu.memory_space<vmem>>, vector<16x32xf32>
      tpu.vector_store %arg10[%c0_28, %c0_29], %50 {strides = array<i32>} : memref<16x32xf32, #tpu.memory_space<vmem>>, vector<16x32xf32>,
    } else {
    }
    %c0 = arith.constant 0 : index
    %c0_1 = arith.constant 0 : index
    %3 = vector.load %arg10[%c0, %c0_1] : memref<16x32xf32, #tpu.memory_space<vmem>>, vector<16x32xf32>
    %c0_2 = arith.constant 0 : index
    %c0_3 = arith.constant 0 : index
    %4 = vector.load %arg7[%c0_2, %c0_3] : memref<32x64xf32, #tpu.memory_space<vmem>>, vector<32x64xf32>
    %cst = arith.constant dense<0.000000e+00> : vector<16x64xf32>
    %5 = tpu.matmul %3, %4, %cst {dimension_numbers = #tpu.dot_dimension_numbers<[1], [0], [0], [1], [0, 0, 1, 1], [], []>} : vector<16x32xf32>, vector<32x64xf32>, vector<16x64xf32> -> vector<16x64xf32>
    %c0_4 = arith.constant 0 : index
    %c0_5 = arith.constant 0 : index
    %6 = vector.load %arg8[%c0_4, %c0_5] : memref<1x64xf32, #tpu.memory_space<vmem>>, vector<1x64xf32>
    %7 = vector.broadcast %6 : vector<1x64xf32> to vector<16x64xf32>
    %8 = arith.addf %5, %7 : vector<16x64xf32>
    %c0_6 = arith.constant 0 : index
    %c0_7 = arith.constant 0 : index
    %9 = vector.load %arg9[%c0_6, %c0_7] : memref<16x64xf32, #tpu.memory_space<vmem>>, vector<16x64xf32>
    tpu.vector_store %arg9[%c0_6, %c0_7], %8 {strides = array<i32>} : memref<16x64xf32, #tpu.memory_space<vmem>>, vector<16x64xf32>,
    return
  }
  func.func @transform_0(%arg0: i32, %arg1: i32) -> (i32, i32) {
    %c0_i32 = arith.constant 0 : i32
    %c0_i32_0 = arith.constant 0 : i32
    return %arg0, %c0_i32 : i32, i32
  }
  func.func @transform_1(%arg0: i32, %arg1: i32) -> (i32, i32) {
    %c0_i32 = arith.constant 0 : i32
    %c0_i32_0 = arith.constant 0 : i32
    %c0_i32_1 = arith.constant 0 : i32
    return %c0_i32, %c0_i32_0 : i32, i32
  }
  func.func @transform_2(%arg0: i32, %arg1: i32) -> (i32, i32) {
    %c0_i32 = arith.constant 0 : i32
    %c0_i32_0 = arith.constant 0 : i32
    %c0_i32_1 = arith.constant 0 : i32
    return %c0_i32, %c0_i32_0 : i32, i32
  }
  func.func @transform_3(%arg0: i32, %arg1: i32) -> (i32, i32) {
    %c0_i32 = arith.constant 0 : i32
    %c0_i32_0 = arith.constant 0 : i32
    %c0_i32_1 = arith.constant 0 : i32
    return %c0_i32, %c0_i32_0 : i32, i32
  }
  func.func @transform_4(%arg0: i32, %arg1: i32) -> (i32, i32) {
    %c0_i32 = arith.constant 0 : i32
    %c0_i32_0 = arith.constant 0 : i32
    %c0_i32_1 = arith.constant 0 : i32
    return %c0_i32, %c0_i32_0 : i32, i32
  }
  func.func @transform_5(%arg0: i32, %arg1: i32) -> (i32, i32) {
    %c0_i32 = arith.constant 0 : i32
    %c0_i32_0 = arith.constant 0 : i32
    return %c0_i32, %arg1 : i32, i32
  }
  func.func @transform_6(%arg0: i32, %arg1: i32) -> (i32, i32) {
    %c0_i32 = arith.constant 0 : i32
    %c0_i32_0 = arith.constant 0 : i32
    return %c0_i32, %arg1 : i32, i32
  }
  func.func @transform_7(%arg0: i32, %arg1: i32) -> (i32, i32) {
    %c0_i32 = arith.constant 0 : i32
    return %arg0, %arg1 : i32, i32
  }
}

module attributes {stable_mosaic.version = 11 : i64} {
  func.func @_lm_head_kernel(%arg0: i32, %arg1: i32, %arg2: memref<16x32xf32, #tpu.memory_space<vmem>>, %arg3: memref<32x32xf32, #tpu.memory_space<vmem>>, %arg4: memref<1x32xf32, #tpu.memory_space<vmem>>, %arg5: memref<1x32xf32, #tpu.memory_space<vmem>>, %arg6: memref<1x32xf32, #tpu.memory_space<vmem>>, %arg7: memref<32x64xf32, #tpu.memory_space<vmem>>, %arg8: memref<1x64xf32, #tpu.memory_space<vmem>>, %arg9: memref<16x64xf32, #tpu.memory_space<vmem>>, %arg10: memref<16x32xf32, #tpu.memory_space<vmem>>) attributes {dimension_semantics = [#tpu.dimension_semantics<parallel>, #tpu.dimension_semantics<arbitrary>], iteration_bounds = array<i64: 1, 1>, scalar_prefetch = 0 : i64, scratch_operands = 1 : i64, tpu.core_type = #tpu.core_type<tc>, window_params = [{transform_indices = @transform_0, window_bounds = array<i64: 16, 32>}, {pipeline_mode = #tpu.pipeline_mode<synchronous>, transform_indices = @transform_1, window_bounds = array<i64: 32, 32>}, {pipeline_mode = #tpu.pipeline_mode<synchronous>, transform_indices = @transform_2, window_bounds = array<i64: 1, 32>}, {pipeline_mode = #tpu.pipeline_mode<synchronous>, transform_indices = @transform_3, window_bounds = array<i64: 1, 32>}, {pipeline_mode = #tpu.pipeline_mode<synchronous>, transform_indices = @transform_4, window_bounds = array<i64: 1, 32>}, {transform_indices = @transform_5, window_bounds = array<i64: 32, 64>}, {transform_indices = @transform_6, window_bounds = array<i64: 1, 64>}, {transform_indices = @transform_7, window_bounds = array<i64: 16, 64>}]} {
    %c0_i32 = arith.constant 0 : i32
    %0 = arith.cmpi eq, %arg1, %c0_i32 : i32
    %1 = arith.extui %0 : i1 to i32
    %c0_i32_0 = arith.constant 0 : i32
    %2 = arith.cmpi ne, %1, %c0_i32_0 : i32
    scf.if %2 {
      %c0_8 = arith.constant 0 : index
      %c0_9 = arith.constant 0 : index
      %10 = vector.load %arg2[%c0_8, %c0_9] : memref<16x32xf32, #tpu.memory_space<vmem>>, vector<16x32xf32>
      %c0_10 = arith.constant 0 : index
      %c0_11 = arith.constant 0 : index
      %11 = vector.load %arg3[%c0_10, %c0_11] : memref<32x32xf32, #tpu.memory_space<vmem>>, vector<32x32xf32>
      %cst_12 = arith.constant dense<0.000000e+00> : vector<16x32xf32>
      %12 = tpu.matmul %10, %11, %cst_12 {dimension_numbers = #tpu.dot_dimension_numbers<[1], [0], [0], [1], [0, 0, 1, 1], [], []>} : vector<16x32xf32>, vector<32x32xf32>, vector<16x32xf32> -> vector<16x32xf32>
      %c0_13 = arith.constant 0 : index
      %c0_14 = arith.constant 0 : index
      %13 = vector.load %arg4[%c0_13, %c0_14] : memref<1x32xf32, #tpu.memory_space<vmem>>, vector<1x32xf32>
      %14 = vector.broadcast %13 : vector<1x32xf32> to vector<16x32xf32>
      %15 = arith.addf %12, %14 : vector<16x32xf32>
      %16 = arith.mulf %15, %15 : vector<16x32xf32>
      %17 = arith.mulf %15, %16 : vector<16x32xf32>
      %cst_15 = arith.constant 4.471500e-02 : f32
      %18 = vector.broadcast %cst_15 : f32 to vector<16x32xf32>
      %19 = arith.mulf %18, %17 : vector<16x32xf32>
      %20 = arith.addf %15, %19 : vector<16x32xf32>
      %cst_16 = arith.constant 0.797884583 : f32
      %21 = vector.broadcast %cst_16 : f32 to vector<16x32xf32>
      %22 = arith.mulf %21, %20 : vector<16x32xf32>
      %23 = math.tanh %22 : vector<16x32xf32>
      %cst_17 = arith.constant 1.000000e+00 : f32
      %24 = vector.broadcast %cst_17 : f32 to vector<16x32xf32>
      %25 = arith.addf %24, %23 : vector<16x32xf32>
      %cst_18 = arith.constant 5.000000e-01 : f32
      %26 = vector.broadcast %cst_18 : f32 to vector<16x32xf32>
      %27 = arith.mulf %26, %25 : vector<16x32xf32>
      %28 = arith.mulf %15, %27 : vector<16x32xf32>
      %cst_19 = arith.constant dense<0.000000e+00> : vector<16xf32>
      %29 = vector.multi_reduction <add>, %28, %cst_19 [1] : vector<16x32xf32> to vector<16xf32>
      %30 = vector.shape_cast %29 : vector<16xf32> to vector<16x1xf32>
      %cst_20 = arith.constant 3.200000e+01 : f32
      %31 = vector.broadcast %cst_20 : f32 to vector<16x1xf32>
      %32 = arith.divf %30, %31 : vector<16x1xf32>
      %33 = vector.broadcast %32 : vector<16x1xf32> to vector<16x32xf32>
      %34 = arith.subf %28, %33 : vector<16x32xf32>
      %35 = arith.mulf %34, %34 : vector<16x32xf32>
      %cst_21 = arith.constant dense<0.000000e+00> : vector<16xf32>
      %36 = vector.multi_reduction <add>, %35, %cst_21 [1] : vector<16x32xf32> to vector<16xf32>
      %37 = vector.shape_cast %36 : vector<16xf32> to vector<16x1xf32>
      %cst_22 = arith.constant 3.200000e+01 : f32
      %38 = vector.broadcast %cst_22 : f32 to vector<16x1xf32>
      %39 = arith.divf %37, %38 : vector<16x1xf32>
      %cst_23 = arith.constant 9.99999996E-13 : f32
      %40 = vector.broadcast %cst_23 : f32 to vector<16x1xf32>
      %41 = arith.addf %39, %40 : vector<16x1xf32>
      %42 = math.rsqrt %41 : vector<16x1xf32>
      %43 = vector.broadcast %42 : vector<16x1xf32> to vector<16x32xf32>
      %44 = arith.mulf %34, %43 : vector<16x32xf32>
      %c0_24 = arith.constant 0 : index
      %c0_25 = arith.constant 0 : index
      %45 = vector.load %arg5[%c0_24, %c0_25] : memref<1x32xf32, #tpu.memory_space<vmem>>, vector<1x32xf32>
      %46 = vector.broadcast %45 : vector<1x32xf32> to vector<16x32xf32>
      %47 = arith.mulf %44, %46 : vector<16x32xf32>
      %c0_26 = arith.constant 0 : index
      %c0_27 = arith.constant 0 : index
      %48 = vector.load %arg6[%c0_26, %c0_27] : memref<1x32xf32, #tpu.memory_space<vmem>>, vector<1x32xf32>
      %49 = vector.broadcast %48 : vector<1x32xf32> to vector<16x32xf32>
      %50 = arith.addf %47, %49 : vector<16x32xf32>
      %c0_28 = arith.constant 0 : index
      %c0_29 = arith.constant 0 : index
      %51 = vector.load %arg10[%c0_28, %c0_29] : memref<16x32xf32, #tpu.memory_space<vmem>>, vector<16x32xf32>
      tpu.vector_store %arg10[%c0_28, %c0_29], %50 {strides = array<i32>} : memref<16x32xf32, #tpu.memory_space<vmem>>, vector<16x32xf32>,
    } else {
    }
    %c0 = arith.constant 0 : index
    %c0_1 = arith.constant 0 : index
    %3 = vector.load %arg10[%c0, %c0_1] : memref<16x32xf32, #tpu.memory_space<vmem>>, vector<16x32xf32>
    %c0_2 = arith.constant 0 : index
    %c0_3 = arith.constant 0 : index
    %4 = vector.load %arg7[%c0_2, %c0_3] : memref<32x64xf32, #tpu.memory_space<vmem>>, vector<32x64xf32>
    %cst = arith.constant dense<0.000000e+00> : vector<16x64xf32>
    %5 = tpu.matmul %3, %4, %cst {dimension_numbers = #tpu.dot_dimension_numbers<[1], [0], [0], [1], [0, 0, 1, 1], [], []>} : vector<16x32xf32>, vector<32x64xf32>, vector<16x64xf32> -> vector<16x64xf32>
    %c0_4 = arith.constant 0 : index
    %c0_5 = arith.constant 0 : index
    %6 = vector.load %arg8[%c0_4, %c0_5] : memref<1x64xf32, #tpu.memory_space<vmem>>, vector<1x64xf32>
    %7 = vector.broadcast %6 : vector<1x64xf32> to vector<16x64xf32>
    %8 = arith.addf %5, %7 : vector<16x64xf32>
    %c0_6 = arith.constant 0 : index
    %c0_7 = arith.constant 0 : index
    %9 = vector.load %arg9[%c0_6, %c0_7] : memref<16x64xf32, #tpu.memory_space<vmem>>, vector<16x64xf32>
    tpu.vector_store %arg9[%c0_6, %c0_7], %8 {strides = array<i32>} : memref<16x64xf32, #tpu.memory_space<vmem>>, vector<16x64xf32>,
    return
  }
  func.func @transform_0(%arg0: i32, %arg1: i32) -> (i32, i32) {
    %c0_i32 = arith.constant 0 : i32
    %c0_i32_0 = arith.constant 0 : i32
    return %arg0, %c0_i32 : i32, i32
  }
  func.func @transform_1(%arg0: i32, %arg1: i32) -> (i32, i32) {
    %c0_i32 = arith.constant 0 : i32
    %c0_i32_0 = arith.constant 0 : i32
    %c0_i32_1 = arith.constant 0 : i32
    return %c0_i32, %c0_i32_0 : i32, i32
  }
  func.func @transform_2(%arg0: i32, %arg1: i32) -> (i32, i32) {
    %c0_i32 = arith.constant 0 : i32
    %c0_i32_0 = arith.constant 0 : i32
    %c0_i32_1 = arith.constant 0 : i32
    return %c0_i32, %c0_i32_0 : i32, i32
  }
  func.func @transform_3(%arg0: i32, %arg1: i32) -> (i32, i32) {
    %c0_i32 = arith.constant 0 : i32
    %c0_i32_0 = arith.constant 0 : i32
    %c0_i32_1 = arith.constant 0 : i32
    return %c0_i32, %c0_i32_0 : i32, i32
  }
  func.func @transform_4(%arg0: i32, %arg1: i32) -> (i32, i32) {
    %c0_i32 = arith.constant 0 : i32
    %c0_i32_0 = arith.constant 0 : i32
    %c0_i32_1 = arith.constant 0 : i32
    return %c0_i32, %c0_i32_0 : i32, i32
  }
  func.func @transform_5(%arg0: i32, %arg1: i32) -> (i32, i32) {
    %c0_i32 = arith.constant 0 : i32
    %c0_i32_0 = arith.constant 0 : i32
    return %c0_i32, %arg1 : i32, i32
  }
  func.func @transform_6(%arg0: i32, %arg1: i32) -> (i32, i32) {
    %c0_i32 = arith.constant 0 : i32
    %c0_i32_0 = arith.constant 0 : i32
    return %c0_i32, %arg1 : i32, i32
  }
  func.func @transform_7(%arg0: i32, %arg1: i32) -> (i32, i32) {
    %c0_i32 = arith.constant 0 : i32
    return %arg0, %arg1 : i32, i32
  }
}

</mosaic_0001>

<bundles_post_ra>
// kernel: tpu_custom_call.1
= control target key start
LH: loop header
LB: loop body
LE: loop exit
PB: predicated region body
PF: predicated region fallthrough
CT: control target
= control target key end

     0   :  { %12 = vsyncpa [#allocation4], 0  ;;  %s492_s0 = inlined_call_operand.hbm [shape: f32[16,32], index: 0, kind: input, shape index: {}]   ;;  %s493_s1 = inlined_call_operand.hbm [shape: f32[32,32], index: 1, kind: input, shape index: {}]   ;;  %s494_s2 = inlined_call_operand.vmem [shape: f32[1,32], index: 2, kind: input, shape index: {}]   ;;  %s495_s3 = inlined_call_operand.vmem [shape: f32[1,32], index: 3, kind: input, shape index: {}]   ;;  %s496_s4 = inlined_call_operand.vmem [shape: f32[1,32], index: 4, kind: input, shape index: {}]   ;;  %s497_s5 = inlined_call_operand.hbm [shape: f32[32,64], index: 5, kind: input, shape index: {}]   ;;  %s498_s6 = inlined_call_operand.vmem [shape: f32[1,64], index: 6, kind: input, shape index: {}]   ;;  %s499_s7 = inlined_call_operand.hbm [shape: f32[16,64], index: 7, kind: output, shape index: {}]  }
   0x1   :  { %13 = vsyncpa [#allocation7], 0 }
   0x2   :  { %14 = vsyncpa [#allocation5], 0  ;;  %s32_s26 = sshll.u32 %s493_s1, 4  ;;  %s399_s27 = smov [#allocation6]   ;;  %s33_s26 = int_to_ptr.hbm [resolvable:$true] %s32_s26 }
   0x3   :  { %s34_s28 = sshll.u32 %s399_s27, 4  ;;  %s19_s8 = sshll.u32 %s492_s0, 4  ;;  %s35_s28 = int_to_ptr.vmem [resolvable:$true] %s34_s28  ;;  %s20_s8 = int_to_ptr.hbm [resolvable:$true] %s19_s8 }
   0x4   :  { %s400_s9 = smov 128   ;;  %s401_s10 = smov 8  }
   0x5   :  { %40 = dma.hbm_to_vmem [thread:$0]  %s33_s26, 512, %s35_s28, [#allocation7], %s400_s9, %s400_s9, %s401_s10  }
   0x6   :  { %s402_s11 = smov [#allocation3]   ;;  %s51_s1 = sshll.u32 %s497_s5, 4  ;;  %s52_s1 = int_to_ptr.hbm [resolvable:$true] %s51_s1 }
   0x7   :  { %s21_s12 = sshll.u32 %s402_s11, 4  ;;  %s403_s0 = smov [#allocation8]   ;;  %s22_s12 = int_to_ptr.vmem [resolvable:$true] %s21_s12 }
   0x8   :  { %27 = dma.hbm_to_vmem [thread:$0]  %s20_s8, 256, %s22_s12, [#allocation4], %s400_s9, %s400_s9, %s401_s10  }
   0x9   :  { %s53_s15 = sshll.u32 %s403_s0, 4  ;;  %s54_s15 = int_to_ptr.vmem [resolvable:$true] %s53_s15 }
   0xa   :  { %59 = dma.hbm_to_vmem [thread:$0]  %s52_s1, 512, %s54_s15, [#allocation7], %s400_s9, %s400_s9, %s401_s10  }
   0xb   :  { %393 = dma.done.wait [#allocation4], 256  }
   0xc   :  { %394 = vsyncadd [#allocation4], 4294967040 }
   0xd   :  { %395 = dma.done.wait [#allocation7], 1024  }
   0xe   :  { %396 = vsyncadd [#allocation7], 4294966272  ;;  %v83_v0 = vld [vmem:[#allocation6 + $0x18] sm:$0xff]  ;;  %v82_v1 = vld [vmem:[#allocation6 + $0x10] sm:$0xff]  ;;  %vm88_vm0 = vcmask 261120   ;;  %v404_v31 = vmov 32.0  }
   0xf   :  { %107 = vmatpush.msra.mxu0 %v83_v0  ;;  %268 = vmatpush.msra.mxu2 %v83_v0  ;;  %v81_v2 = vld [vmem:[#allocation6 + $0x8] sm:$0xff]  ;;  %v80_v3 = vld [vmem:[#allocation6] sm:$0xff]  ;;  %v78_v4 = vld [vmem:[#allocation3] sm:$0xff]  ;;  %vm241_vm8 = vcmask 523264   ;;  %s405_s20 = smov [#allocation9]   ;;  %s250_s24 = sshll.u32 %s499_s7, 4  ;;  %s251_s24 = int_to_ptr.hbm [resolvable:$true] %s250_s24 }
  0x10   :  { %v79_v5 = vld [vmem:[#allocation3 + $0x8] sm:$0xff]  ;;  %v283_v6 = vld [vmem:[%s494_s2] ss:$0 sm:$0xff]  ;;  %v205_v49 = vld [vmem:[#allocation8 + $0x10] sm:$0xff]  ;;  %s248_s21 = sshll.u32 %s405_s20, 4  ;;  %s249_s21 = int_to_ptr.vmem [resolvable:$true] %s248_s21 }
  0x11   :  { %108 = vmatpush.msra.mxu0 %v82_v1  ;;  %269 = vmatpush.msra.mxu2 %v82_v1  ;;  %v206_v48 = vld [vmem:[#allocation8 + $0x18] sm:$0xff]  ;;  %v204_v52 = vld [vmem:[#allocation8 + $0x8] sm:$0xff]  ;;  %v203_v54 = vld [vmem:[#allocation8] sm:$0xff] }
  0x12   :  { %272 = vmatpush.msra.mxu3 %v206_v48  ;;  %230 = vmatpush.msra.mxu1 %v206_v48 }
  0x13   :  { %109 = vmatpush.msra.mxu0 %v81_v2  ;;  %270 = vmatpush.msra.mxu2 %v81_v2  ;;  %v284_v2 = vld [vmem:[%s495_s3] ss:$0 sm:$0xff] }
  0x14   :  { %273 = vmatpush.msra.mxu3 %v205_v49  ;;  %231 = vmatpush.msra.mxu1 %v205_v49 }
  0x15   :  { %110 = vmatpush.msra.mxu0 %v80_v3  ;;  %271 = vmatpush.msra.mxu2 %v80_v3 }
  0x16   :  { %264 = vmatmul.msk.f32.vlgmr.msra.gmra.mxu0 %vm88_vm0, %v78_v4  ;;  %265 = vmatmul.msk.f32.vlgmr.msra.gmra.mxu2 %vm88_vm0, %v79_v5  ;;  %v285_v5 = vld [vmem:[%s496_s4] ss:$0 sm:$0xff] }
  0x17   :  { %274 = vmatpush.msra.mxu3 %v204_v52  ;;  %232 = vmatpush.msra.mxu1 %v204_v52 }
  0x19   :  { %275 = vmatpush.msra.mxu3 %v203_v54  ;;  %233 = vmatpush.msra.mxu1 %v203_v54 }
  0x93   :  { %v112_v7 = vpop.f32.mrf.mxu0 }
  0x94   :  { %v113_v8 = vadd.f32 %v283_v6, %v112_v7 }
  0x96   :  { %v118_v9 = vmul.f32 %v113_v8, %v113_v8 }
  0x98   :  { %v120_v10 = vmul.f32 %v118_v9, %v113_v8 }
  0x99   :  { %v115_v11 = vpop.f32.mrf.mxu2 }
  0x9a   :  { %v122_v12 = vmul.f32 0.044715, %v120_v10  ;;  %v116_v13 = vadd.f32 %v283_v6, %v115_v11 }
  0x9c   :  { %v119_v14 = vmul.f32 %v116_v13, %v116_v13  ;;  %v124_v15 = vadd.f32 %v122_v12, %v113_v8 }
  0x9e   :  { %v121_v16 = vmul.f32 %v119_v14, %v116_v13  ;;  %v126_v18 = vmul.f32 0.7978846, %v124_v15 }
  0xa0   :  { %v123_v17 = vmul.f32 0.044715, %v121_v16  ;;  %287 = vtanh.f32 %v126_v18  ;;  %v286_v18 = vld [vmem:[%s498_s6] ss:$0 sm:$0xff] }
  0xa2   :  { %v125_v19 = vadd.f32 %v123_v17, %v116_v13 }
  0xa4   :  { %v127_v20 = vmul.f32 0.7978846, %v125_v19 }
  0xa6   :  { %289 = vtanh.f32 %v127_v20  ;;  %v288_v21 = vpop.eup %287 }
  0xa7   :  { %v130_v25 = vadd.f32 1.0, %v288_v21  ;;  %291 = vrcp.f32 %v404_v31 }
  0xa9   :  { %v132_v28 = vmul.f32 0.5, %v130_v25 }
  0xab   :  { %v134_v29 = vmul.f32 %v132_v28, %v113_v8 }
  0xac   :  { %v290_v22 = vpop.eup %289 }
  0xad   :  { %v131_v23 = vadd.f32 1.0, %v290_v22  ;;  %v136_v30 = vsel %vm88_vm0, %v134_v29, 0.0  ;;  %v292_v32 = vpop.eup %291 }
  0xae   :  { %v143_v33 = vmul.f32 32.0, %v292_v32  ;;  %vm147_vm1 = vweird.f32 %v292_v32 }
  0xaf   :  { %v133_v24 = vmul.f32 0.5, %v131_v23 }
  0xb0   :  { %v144_v34 = vsub.f32 1.0, %v143_v33 }
  0xb1   :  { %v135_v26 = vmul.f32 %v133_v24, %v116_v13 }
  0xb2   :  { %v145_v35 = vmul.f32 %v292_v32, %v144_v34 }
  0xb3   :  { %v139_v27 = vsel %vm88_vm0, %v135_v26, 0.0 }
  0xb4   :  { %140 = vadd.xlane.f32.xlu0 %v139_v27  ;;  %v146_v36 = vadd.f32 %v292_v32, %v145_v35 }
  0xb6   :  { %v148_v37 = vsel %vm147_vm1, %v292_v32, %v146_v36 }
  0xbc   :  { %137 = vadd.xlane.f32.xlu0 %v136_v30 }
 0x127   :  { %v141_v38 = vpop.xlane.xlu0 %140 }
 0x128   :  { %v150_v39 = vmul.f32 %v148_v37, %v141_v38 }
 0x12a   :  { %v152_v40 = vsub.f32 %v135_v26, %v150_v39 }
 0x12c   :  { %v154_v41 = vmul.f32 %v152_v40, %v152_v40 }
 0x12e   :  { %v158_v42 = vsel %vm88_vm0, %v154_v41, 0.0 }
 0x12f   :  { %159 = vadd.xlane.f32.xlu1 %v158_v42  ;;  %v138_v43 = vpop.xlane.xlu0 %137 }
 0x130   :  { %v149_v44 = vmul.f32 %v148_v37, %v138_v43 }
 0x132   :  { %v151_v45 = vsub.f32 %v134_v29, %v149_v44 }
 0x134   :  { %v153_v46 = vmul.f32 %v151_v45, %v151_v45 }
 0x136   :  { %v155_v47 = vsel %vm88_vm0, %v153_v46, 0.0 }
 0x137   :  { %156 = vadd.xlane.f32.xlu1 %v155_v47 }
 0x1a2   :  { %v160_v50 = vpop.xlane.xlu1 %159 }
 0x1a3   :  { %v162_v51 = vmul.f32 %v160_v50, %v148_v37 }
 0x1a5   :  { %v164_v53 = vadd.f32 1e-12, %v162_v51 }
 0x1a7   :  { %293 = vrsqrt.f32 %v164_v53  ;;  %vm181_vm3 = vweird.f32 %v164_v53 }
 0x1aa   :  { %v157_v55 = vpop.xlane.xlu1 %156 }
 0x1ab   :  { %v161_v56 = vmul.f32 %v157_v55, %v148_v37 }
 0x1ad   :  { %v294_v57 = vpop.eup %293  ;;  %v163_v58 = vadd.f32 1e-12, %v161_v56 }
 0x1ae   :  { %v176_v59 = vmul.f32 %v294_v57, %v164_v53  ;;  %vm182_vm2 = vweird.f32 %v294_v57 }
 0x1af   :  { %295 = vrsqrt.f32 %v163_v58  ;;  %vm183_vm4 = vmor %vm181_vm3, %vm182_vm2  ;;  %vm171_vm6 = vweird.f32 %v163_v58 }
 0x1b0   :  { %v177_v60 = vmul.f32 %v294_v57, %v176_v59 }
 0x1b2   :  { %v178_v61 = vmul.f32 0.5, %v177_v60 }
 0x1b4   :  { %v179_v62 = vsub.f32 1.5, %v178_v61 }
 0x1b5   :  { %v296_v63 = vpop.eup %295 }
 0x1b6   :  { %v180_v0 = vmul.f32 %v294_v57, %v179_v62  ;;  %v166_v1 = vmul.f32 %v296_v63, %v163_v58  ;;  %vm172_vm5 = vweird.f32 %v296_v63 }
 0x1b7   :  { %vm173_vm7 = vmor %vm171_vm6, %vm172_vm5 }
 0x1b8   :  { %v184_v3 = vsel %vm183_vm4, %v294_v57, %v180_v0  ;;  %v167_v4 = vmul.f32 %v296_v63, %v166_v1 }
 0x1b9   :  { %v186_v6 = vmul.f32 %v184_v3, %v152_v40 }
 0x1ba   :  { %v168_v7 = vmul.f32 0.5, %v167_v4 }
 0x1bb   :  { %v192_v8 = vmul.f32 %v284_v2, %v186_v6 }
 0x1bc   :  { %v169_v9 = vsub.f32 1.5, %v168_v7 }
 0x1bd   :  { %v198_v10 = vadd.f32 %v285_v5, %v192_v8 }
 0x1be   :  { %v170_v11 = vmul.f32 %v296_v63, %v169_v9 }
 0x1bf   :  { %200 = vst.msk [vmem:[#allocation2 + $0x8] sm:$0xff] %vm88_vm0, %v198_v10 }
 0x1c0   :  { %v174_v12 = vsel %vm173_vm7, %v296_v63, %v170_v11 }
 0x1c1   :  { %v185_v13 = vmul.f32 %v174_v12, %v151_v45 }
 0x1c3   :  { %v191_v14 = vmul.f32 %v284_v2, %v185_v13 }
 0x1c5   :  { %v197_v15 = vadd.f32 %v285_v5, %v191_v14 }
 0x1c6   :  { %v202_v16 = vld [vmem:[#allocation2 + $0x8] sm:$0xff] }
 0x1c7   :  { %199 = vst.msk [vmem:[#allocation2] sm:$0xff] %vm88_vm0, %v197_v15  ;;  %267 = vmatmul.msk.f32.vlgmr.msra.gmra.mxu3 %vm88_vm0, %v202_v16 }
 0x1ce   :  { %v201_v17 = vld [vmem:[#allocation2] sm:$0xff] }
 0x1cf   :  { %266 = vmatmul.msk.f32.vlgmr.msra.gmra.mxu1 %vm88_vm0, %v201_v17 }
 0x24a   :  { %v238_v19 = vpop.f32.mrf.mxu3 }
 0x24b   :  { %v239_v20 = vadd.f32 %v286_v18, %v238_v19 }
 0x24c   :  { %v235_v21 = vpop.f32.mrf.mxu1 }
 0x24d   :  { %243 = vst.msk [vmem:[#allocation9 + $0x8] sm:$0xff] %vm241_vm8, %v239_v20  ;;  %v236_v22 = vadd.f32 %v286_v18, %v235_v21 }
 0x24f   :  { %242 = vst.msk [vmem:[#allocation9] sm:$0xff] %vm241_vm8, %v236_v22 }
 0x250   :  { %256 = dma.vmem_to_hbm [thread:$0]  %s249_s21, 256, %s251_s24, [#allocation5], %s400_s9, %s400_s9, %s401_s10  }
 0x251   :  { %397 = dma.done.wait [#allocation5], 256  }
 0x252   :  { %398 = vsyncadd [#allocation5], 4294967040 }
 0x253   :  { %261 = vsyncpa [#allocation4], 1 }
 0x254   :  { %262 = vsyncpa [#allocation7], 1 }
 0x255   :  { %263 = vsyncpa [#allocation5], 1 }

// kernel: tpu_custom_call.1
= control target key start
LH: loop header
LB: loop body
LE: loop exit
PB: predicated region body
PF: predicated region fallthrough
CT: control target
= control target key end

     0   :  { %12 = vsyncpa [#allocation4], 0  ;;  %s492_s0 = inlined_call_operand.hbm [shape: f32[16,32], index: 0, kind: input, shape index: {}]   ;;  %s493_s1 = inlined_call_operand.hbm [shape: f32[32,32], index: 1, kind: input, shape index: {}]   ;;  %s494_s2 = inlined_call_operand.vmem [shape: f32[1,32], index: 2, kind: input, shape index: {}]   ;;  %s495_s3 = inlined_call_operand.vmem [shape: f32[1,32], index: 3, kind: input, shape index: {}]   ;;  %s496_s4 = inlined_call_operand.vmem [shape: f32[1,32], index: 4, kind: input, shape index: {}]   ;;  %s497_s5 = inlined_call_operand.hbm [shape: f32[32,64], index: 5, kind: input, shape index: {}]   ;;  %s498_s6 = inlined_call_operand.vmem [shape: f32[1,64], index: 6, kind: input, shape index: {}]   ;;  %s499_s7 = inlined_call_operand.hbm [shape: f32[16,64], index: 7, kind: output, shape index: {}]  }
   0x1   :  { %13 = vsyncpa [#allocation7], 0 }
   0x2   :  { %14 = vsyncpa [#allocation5], 0  ;;  %s32_s26 = sshll.u32 %s493_s1, 4  ;;  %s399_s27 = smov [#allocation6]   ;;  %s33_s26 = int_to_ptr.hbm [resolvable:$true] %s32_s26 }
   0x3   :  { %s34_s28 = sshll.u32 %s399_s27, 4  ;;  %s19_s8 = sshll.u32 %s492_s0, 4  ;;  %s35_s28 = int_to_ptr.vmem [resolvable:$true] %s34_s28  ;;  %s20_s8 = int_to_ptr.hbm [resolvable:$true] %s19_s8 }
   0x4   :  { %s400_s9 = smov 128   ;;  %s401_s10 = smov 8  }
   0x5   :  { %40 = dma.hbm_to_vmem [thread:$0]  %s33_s26, 512, %s35_s28, [#allocation7], %s400_s9, %s400_s9, %s401_s10  }
   0x6   :  { %s402_s11 = smov [#allocation3]   ;;  %s51_s1 = sshll.u32 %s497_s5, 4  ;;  %s52_s1 = int_to_ptr.hbm [resolvable:$true] %s51_s1 }
   0x7   :  { %s21_s12 = sshll.u32 %s402_s11, 4  ;;  %s403_s0 = smov [#allocation8]   ;;  %s22_s12 = int_to_ptr.vmem [resolvable:$true] %s21_s12 }
   0x8   :  { %27 = dma.hbm_to_vmem [thread:$0]  %s20_s8, 256, %s22_s12, [#allocation4], %s400_s9, %s400_s9, %s401_s10  }
   0x9   :  { %s53_s15 = sshll.u32 %s403_s0, 4  ;;  %s54_s15 = int_to_ptr.vmem [resolvable:$true] %s53_s15 }
   0xa   :  { %59 = dma.hbm_to_vmem [thread:$0]  %s52_s1, 512, %s54_s15, [#allocation7], %s400_s9, %s400_s9, %s401_s10  }
   0xb   :  { %393 = dma.done.wait [#allocation4], 256  }
   0xc   :  { %394 = vsyncadd [#allocation4], 4294967040 }
   0xd   :  { %395 = dma.done.wait [#allocation7], 1024  }
   0xe   :  { %396 = vsyncadd [#allocation7], 4294966272  ;;  %v83_v0 = vld [vmem:[#allocation6 + $0x18] sm:$0xff]  ;;  %v82_v1 = vld [vmem:[#allocation6 + $0x10] sm:$0xff]  ;;  %vm88_vm0 = vcmask 261120   ;;  %v404_v31 = vmov 32.0  }
   0xf   :  { %107 = vmatpush.msra.mxu0 %v83_v0  ;;  %268 = vmatpush.msra.mxu2 %v83_v0  ;;  %v81_v2 = vld [vmem:[#allocation6 + $0x8] sm:$0xff]  ;;  %v80_v3 = vld [vmem:[#allocation6] sm:$0xff]  ;;  %v78_v4 = vld [vmem:[#allocation3] sm:$0xff]  ;;  %vm241_vm8 = vcmask 523264   ;;  %s405_s20 = smov [#allocation9]   ;;  %s250_s24 = sshll.u32 %s499_s7, 4  ;;  %s251_s24 = int_to_ptr.hbm [resolvable:$true] %s250_s24 }
  0x10   :  { %v79_v5 = vld [vmem:[#allocation3 + $0x8] sm:$0xff]  ;;  %v283_v6 = vld [vmem:[%s494_s2] ss:$0 sm:$0xff]  ;;  %v205_v49 = vld [vmem:[#allocation8 + $0x10] sm:$0xff]  ;;  %s248_s21 = sshll.u32 %s405_s20, 4  ;;  %s249_s21 = int_to_ptr.vmem [resolvable:$true] %s248_s21 }
  0x11   :  { %108 = vmatpush.msra.mxu0 %v82_v1  ;;  %269 = vmatpush.msra.mxu2 %v82_v1  ;;  %v206_v48 = vld [vmem:[#allocation8 + $0x18] sm:$0xff]  ;;  %v204_v52 = vld [vmem:[#allocation8 + $0x8] sm:$0xff]  ;;  %v203_v54 = vld [vmem:[#allocation8] sm:$0xff] }
  0x12   :  { %272 = vmatpush.msra.mxu3 %v206_v48  ;;  %230 = vmatpush.msra.mxu1 %v206_v48 }
  0x13   :  { %109 = vmatpush.msra.mxu0 %v81_v2  ;;  %270 = vmatpush.msra.mxu2 %v81_v2  ;;  %v284_v2 = vld [vmem:[%s495_s3] ss:$0 sm:$0xff] }
  0x14   :  { %273 = vmatpush.msra.mxu3 %v205_v49  ;;  %231 = vmatpush.msra.mxu1 %v205_v49 }
  0x15   :  { %110 = vmatpush.msra.mxu0 %v80_v3  ;;  %271 = vmatpush.msra.mxu2 %v80_v3 }
  0x16   :  { %264 = vmatmul.msk.f32.vlgmr.msra.gmra.mxu0 %vm88_vm0, %v78_v4  ;;  %265 = vmatmul.msk.f32.vlgmr.msra.gmra.mxu2 %vm88_vm0, %v79_v5  ;;  %v285_v5 = vld [vmem:[%s496_s4] ss:$0 sm:$0xff] }
  0x17   :  { %274 = vmatpush.msra.mxu3 %v204_v52  ;;  %232 = vmatpush.msra.mxu1 %v204_v52 }
  0x19   :  { %275 = vmatpush.msra.mxu3 %v203_v54  ;;  %233 = vmatpush.msra.mxu1 %v203_v54 }
  0x93   :  { %v112_v7 = vpop.f32.mrf.mxu0 }
  0x94   :  { %v113_v8 = vadd.f32 %v283_v6, %v112_v7 }
  0x96   :  { %v118_v9 = vmul.f32 %v113_v8, %v113_v8 }
  0x98   :  { %v120_v10 = vmul.f32 %v118_v9, %v113_v8 }
  0x99   :  { %v115_v11 = vpop.f32.mrf.mxu2 }
  0x9a   :  { %v122_v12 = vmul.f32 0.044715, %v120_v10  ;;  %v116_v13 = vadd.f32 %v283_v6, %v115_v11 }
  0x9c   :  { %v119_v14 = vmul.f32 %v116_v13, %v116_v13  ;;  %v124_v15 = vadd.f32 %v122_v12, %v113_v8 }
  0x9e   :  { %v121_v16 = vmul.f32 %v119_v14, %v116_v13  ;;  %v126_v18 = vmul.f32 0.7978846, %v124_v15 }
  0xa0   :  { %v123_v17 = vmul.f32 0.044715, %v121_v16  ;;  %287 = vtanh.f32 %v126_v18  ;;  %v286_v18 = vld [vmem:[%s498_s6] ss:$0 sm:$0xff] }
  0xa2   :  { %v125_v19 = vadd.f32 %v123_v17, %v116_v13 }
  0xa4   :  { %v127_v20 = vmul.f32 0.7978846, %v125_v19 }
  0xa6   :  { %289 = vtanh.f32 %v127_v20  ;;  %v288_v21 = vpop.eup %287 }
  0xa7   :  { %v130_v25 = vadd.f32 1.0, %v288_v21  ;;  %291 = vrcp.f32 %v404_v31 }
  0xa9   :  { %v132_v28 = vmul.f32 0.5, %v130_v25 }
  0xab   :  { %v134_v29 = vmul.f32 %v132_v28, %v113_v8 }
  0xac   :  { %v290_v22 = vpop.eup %289 }
  0xad   :  { %v131_v23 = vadd.f32 1.0, %v290_v22  ;;  %v136_v30 = vsel %vm88_vm0, %v134_v29, 0.0  ;;  %v292_v32 = vpop.eup %291 }
  0xae   :  { %v143_v33 = vmul.f32 32.0, %v292_v32  ;;  %vm147_vm1 = vweird.f32 %v292_v32 }
  0xaf   :  { %v133_v24 = vmul.f32 0.5, %v131_v23 }
  0xb0   :  { %v144_v34 = vsub.f32 1.0, %v143_v33 }
  0xb1   :  { %v135_v26 = vmul.f32 %v133_v24, %v116_v13 }
  0xb2   :  { %v145_v35 = vmul.f32 %v292_v32, %v144_v34 }
  0xb3   :  { %v139_v27 = vsel %vm88_vm0, %v135_v26, 0.0 }
  0xb4   :  { %140 = vadd.xlane.f32.xlu0 %v139_v27  ;;  %v146_v36 = vadd.f32 %v292_v32, %v145_v35 }
  0xb6   :  { %v148_v37 = vsel %vm147_vm1, %v292_v32, %v146_v36 }
  0xbc   :  { %137 = vadd.xlane.f32.xlu0 %v136_v30 }
 0x127   :  { %v141_v38 = vpop.xlane.xlu0 %140 }
 0x128   :  { %v150_v39 = vmul.f32 %v148_v37, %v141_v38 }
 0x12a   :  { %v152_v40 = vsub.f32 %v135_v26, %v150_v39 }
 0x12c   :  { %v154_v41 = vmul.f32 %v152_v40, %v152_v40 }
 0x12e   :  { %v158_v42 = vsel %vm88_vm0, %v154_v41, 0.0 }
 0x12f   :  { %159 = vadd.xlane.f32.xlu1 %v158_v42  ;;  %v138_v43 = vpop.xlane.xlu0 %137 }
 0x130   :  { %v149_v44 = vmul.f32 %v148_v37, %v138_v43 }
 0x132   :  { %v151_v45 = vsub.f32 %v134_v29, %v149_v44 }
 0x134   :  { %v153_v46 = vmul.f32 %v151_v45, %v151_v45 }
 0x136   :  { %v155_v47 = vsel %vm88_vm0, %v153_v46, 0.0 }
 0x137   :  { %156 = vadd.xlane.f32.xlu1 %v155_v47 }
 0x1a2   :  { %v160_v50 = vpop.xlane.xlu1 %159 }
 0x1a3   :  { %v162_v51 = vmul.f32 %v160_v50, %v148_v37 }
 0x1a5   :  { %v164_v53 = vadd.f32 1e-12, %v162_v51 }
 0x1a7   :  { %293 = vrsqrt.f32 %v164_v53  ;;  %vm181_vm3 = vweird.f32 %v164_v53 }
 0x1aa   :  { %v157_v55 = vpop.xlane.xlu1 %156 }
 0x1ab   :  { %v161_v56 = vmul.f32 %v157_v55, %v148_v37 }
 0x1ad   :  { %v294_v57 = vpop.eup %293  ;;  %v163_v58 = vadd.f32 1e-12, %v161_v56 }
 0x1ae   :  { %v176_v59 = vmul.f32 %v294_v57, %v164_v53  ;;  %vm182_vm2 = vweird.f32 %v294_v57 }
 0x1af   :  { %295 = vrsqrt.f32 %v163_v58  ;;  %vm183_vm4 = vmor %vm181_vm3, %vm182_vm2  ;;  %vm171_vm6 = vweird.f32 %v163_v58 }
 0x1b0   :  { %v177_v60 = vmul.f32 %v294_v57, %v176_v59 }
 0x1b2   :  { %v178_v61 = vmul.f32 0.5, %v177_v60 }
 0x1b4   :  { %v179_v62 = vsub.f32 1.5, %v178_v61 }
 0x1b5   :  { %v296_v63 = vpop.eup %295 }
 0x1b6   :  { %v180_v0 = vmul.f32 %v294_v57, %v179_v62  ;;  %v166_v1 = vmul.f32 %v296_v63, %v163_v58  ;;  %vm172_vm5 = vweird.f32 %v296_v63 }
 0x1b7   :  { %vm173_vm7 = vmor %vm171_vm6, %vm172_vm5 }
 0x1b8   :  { %v184_v3 = vsel %vm183_vm4, %v294_v57, %v180_v0  ;;  %v167_v4 = vmul.f32 %v296_v63, %v166_v1 }
 0x1b9   :  { %v186_v6 = vmul.f32 %v184_v3, %v152_v40 }
 0x1ba   :  { %v168_v7 = vmul.f32 0.5, %v167_v4 }
 0x1bb   :  { %v192_v8 = vmul.f32 %v284_v2, %v186_v6 }
 0x1bc   :  { %v169_v9 = vsub.f32 1.5, %v168_v7 }
 0x1bd   :  { %v198_v10 = vadd.f32 %v285_v5, %v192_v8 }
 0x1be   :  { %v170_v11 = vmul.f32 %v296_v63, %v169_v9 }
 0x1bf   :  { %200 = vst.msk [vmem:[#allocation2 + $0x8] sm:$0xff] %vm88_vm0, %v198_v10 }
 0x1c0   :  { %v174_v12 = vsel %vm173_vm7, %v296_v63, %v170_v11 }
 0x1c1   :  { %v185_v13 = vmul.f32 %v174_v12, %v151_v45 }
 0x1c3   :  { %v191_v14 = vmul.f32 %v284_v2, %v185_v13 }
 0x1c5   :  { %v197_v15 = vadd.f32 %v285_v5, %v191_v14 }
 0x1c6   :  { %v202_v16 = vld [vmem:[#allocation2 + $0x8] sm:$0xff] }
 0x1c7   :  { %199 = vst.msk [vmem:[#allocation2] sm:$0xff] %vm88_vm0, %v197_v15  ;;  %267 = vmatmul.msk.f32.vlgmr.msra.gmra.mxu3 %vm88_vm0, %v202_v16 }
 0x1ce   :  { %v201_v17 = vld [vmem:[#allocation2] sm:$0xff] }
 0x1cf   :  { %266 = vmatmul.msk.f32.vlgmr.msra.gmra.mxu1 %vm88_vm0, %v201_v17 }
 0x24a   :  { %v238_v19 = vpop.f32.mrf.mxu3 }
 0x24b   :  { %v239_v20 = vadd.f32 %v286_v18, %v238_v19 }
 0x24c   :  { %v235_v21 = vpop.f32.mrf.mxu1 }
 0x24d   :  { %243 = vst.msk [vmem:[#allocation9 + $0x8] sm:$0xff] %vm241_vm8, %v239_v20  ;;  %v236_v22 = vadd.f32 %v286_v18, %v235_v21 }
 0x24f   :  { %242 = vst.msk [vmem:[#allocation9] sm:$0xff] %vm241_vm8, %v236_v22 }
 0x250   :  { %256 = dma.vmem_to_hbm [thread:$0]  %s249_s21, 256, %s251_s24, [#allocation5], %s400_s9, %s400_s9, %s401_s10  }
 0x251   :  { %397 = dma.done.wait [#allocation5], 256  }
 0x252   :  { %398 = vsyncadd [#allocation5], 4294967040 }
 0x253   :  { %261 = vsyncpa [#allocation4], 1 }
 0x254   :  { %262 = vsyncpa [#allocation7], 1 }
 0x255   :  { %263 = vsyncpa [#allocation5], 1 }

</bundles_post_ra>
